<compile_context>
chip_gen: v6e
topology: v6e:2x2x1
jax: 0.10.0
libtpu: 0.0.40
codegen_flags: <defaults>
</compile_context>

<pallas_src>
import math

import jax
import jax.numpy as jnp
from jax import lax
from jax.experimental import pallas as pl
from jax.experimental.pallas import tpu as pltpu


# ----------------------------------------------------------------------------
# Helpers
# ----------------------------------------------------------------------------
def _round_up(x, m):
    return (x + m - 1) // m * m


def _largest_tile(dim, cap, quantum):
    """Largest multiple of `quantum` <= cap that divides `dim`.

    `dim` must itself be a multiple of `quantum` (so `quantum` always works).
    """
    cap = max(quantum, min(cap, dim))
    t = (cap // quantum) * quantum
    while dim % t:
        t -= quantum
    return t


def _pad2(a, rows, cols):
    pr, pc = rows - a.shape[0], cols - a.shape[1]
    if pr or pc:
        a = jnp.pad(a, ((0, pr), (0, pc)))
    return a


# Contract last axis of x (tm, tk) with last axis of w (tn, tk) -> (tm, tn).
# Weights stream in their natural (N, K) layout; no in-kernel transpose.
_DN = (((1,), (1,)), ((), ()))


# ----------------------------------------------------------------------------
# Kernels
# ----------------------------------------------------------------------------
def _make_train_direct_kernel(mxu_dtype):
    """Single-step (full-K) training kernel: no accumulator, direct write."""
    def kernel(x_ref, wmu_ref, wsig_ref, ein_ref, eout_ref, bmu_ref, bsig_ref,
               o_ref):
        x = x_ref[...].astype(jnp.float32)
        xs = x * ein_ref[...].astype(jnp.float32)            # (tm,K) * (1,K)
        part = lax.dot_general(x.astype(mxu_dtype),
                               wmu_ref[...].astype(mxu_dtype),
                               _DN, preferred_element_type=jnp.float32)
        sig = lax.dot_general(xs.astype(mxu_dtype),
                              wsig_ref[...].astype(mxu_dtype),
                              _DN, preferred_element_type=jnp.float32)
        eout = eout_ref[...].astype(jnp.float32)              # (1, tn)
        bias = bmu_ref[...].astype(jnp.float32) + bsig_ref[...].astype(jnp.float32) * eout
        o_ref[...] = (part + sig * eout + bias).astype(o_ref.dtype)
    return kernel


def _make_train_reduce_kernel(mxu_dtype, tk):
    """Fallback training kernel with a K-reduction grid axis (very large K)."""
    def kernel(x_ref, wmu_ref, wsig_ref, ein_ref, eout_ref, bmu_ref, bsig_ref,
               o_ref, acc_ref):
        k = pl.program_id(2)

        @pl.when(k == 0)
        def _():
            acc_ref[...] = jnp.zeros_like(acc_ref)

        x = x_ref[...].astype(jnp.float32)
        # eps_in is VMEM-resident (full (1, k_pad) block); slice the current
        # K window in-kernel instead of re-DMAing it every step.
        koff = pl.multiple_of(k * tk, 128)
        ein = ein_ref[:, pl.ds(koff, tk)].astype(jnp.float32)
        xs = x * ein
        part = lax.dot_general(x.astype(mxu_dtype),
                               wmu_ref[...].astype(mxu_dtype),
                               _DN, preferred_element_type=jnp.float32)
        sig = lax.dot_general(xs.astype(mxu_dtype),
                              wsig_ref[...].astype(mxu_dtype),
                              _DN, preferred_element_type=jnp.float32)
        eout = eout_ref[...].astype(jnp.float32)
        acc_ref[...] += part + sig * eout

        @pl.when(k == pl.num_programs(2) - 1)
        def _():
            bias = (bmu_ref[...].astype(jnp.float32)
                    + bsig_ref[...].astype(jnp.float32) * eout)
            o_ref[...] = (acc_ref[...] + bias).astype(o_ref.dtype)
    return kernel


def _make_eval_direct_kernel(mxu_dtype):
    def kernel(x_ref, wmu_ref, bmu_ref, o_ref):
        y = lax.dot_general(x_ref[...].astype(mxu_dtype),
                            wmu_ref[...].astype(mxu_dtype),
                            _DN, preferred_element_type=jnp.float32)
        o_ref[...] = (y + bmu_ref[...].astype(jnp.float32)).astype(o_ref.dtype)
    return kernel


def _make_eval_reduce_kernel(mxu_dtype):
    def kernel(x_ref, wmu_ref, bmu_ref, o_ref, acc_ref):
        k = pl.program_id(2)

        @pl.when(k == 0)
        def _():
            acc_ref[...] = jnp.zeros_like(acc_ref)

        acc_ref[...] += lax.dot_general(x_ref[...].astype(mxu_dtype),
                                        wmu_ref[...].astype(mxu_dtype),
                                        _DN, preferred_element_type=jnp.float32)

        @pl.when(k == pl.num_programs(2) - 1)
        def _():
            o_ref[...] = (acc_ref[...] + bmu_ref[...].astype(jnp.float32)
                          ).astype(o_ref.dtype)
    return kernel


# ----------------------------------------------------------------------------
# Wrapper
# ----------------------------------------------------------------------------
def noisy_linear_forward(x, weight_mu, weight_sigma, epsilon_in, epsilon_out,
                         bias_mu, bias_sigma, *, training=True,
                         mxu_dtype=None):
    """Pallas TPU implementation of FactorizedNoisyLinear.forward.

    epsilon_in / epsilon_out are the factorized noise vectors f(eps_in),
    f(eps_out).  The module's buffers are weight_epsilon = outer(eps_out,
    eps_in) and bias_epsilon = eps_out; the fused formulation here is
    algebraically identical without materializing the (out, in) matrix.

    mxu_dtype: optional dtype the MXU operands are cast to (e.g.
    jnp.bfloat16 on v6e/v7x).  Accumulation stays float32.
    """
    batch, in_features = x.shape
    out_features = weight_mu.shape[0]
    dtype = x.dtype
    if mxu_dtype is None:
        mxu_dtype = dtype

    # ---- generation-aware VMEM budget -------------------------------------
    try:
        vmem_cap = int(pltpu.get_tpu_info().vmem_capacity_bytes)
    except Exception:
        vmem_cap = 64 * 1024 * 1024          # conservative (v7x per-TC size)
    budget = int(vmem_cap * 0.7)             # leave compiler headroom

    # ---- tiling ------------------------------------------------------------
    # 128-aligned weight dims; tile sizes are divisors of the aligned dims so
    # no padding beyond alignment is ever added (padding is a no-op for
    # already-aligned layers).
    # TODO(synk): for unaligned layers, pad weight_mu/weight_sigma once at
    # parameter creation instead of per-call to avoid the extra HBM pass.
    n_pad = _round_up(out_features, 128)
    k_pad = _round_up(in_features, 128)

    tm = min(_round_up(batch, 8), 256)        # fill the 256-row MXU when possible
    m_pad = _round_up(batch, tm)
    tn = _largest_tile(n_pad, 512, 128)

    x_itemsize = jnp.dtype(dtype).itemsize
    w_itemsize = jnp.dtype(weight_mu.dtype).itemsize
    n_wstreams = 2 if training else 1

    def _footprint(tk_):
        per_step = (tm * tk_ * x_itemsize
                    + n_wstreams * tn * tk_ * w_itemsize
                    + tm * tn * x_itemsize)
        vectors = (k_pad + 3 * n_pad) * 4
        scratch = tm * tn * 4
        return 2 * per_step + vectors + scratch   # double-buffered streams

    tk = k_pad                                 # prefer full-K single step
    while _footprint(tk) > budget and tk > 128:
        tk = _largest_tile(k_pad, tk - 128, 128)
    single_k = (tk == k_pad)

    # Give the second TensorCore on v7x something to do when the grid would
    # otherwise collapse to a single block (negligible cost on 1-TC chips).
    if m_pad // tm == 1 and n_pad // tn == 1 and n_pad >= 256:
        tn = _largest_tile(n_pad, n_pad // 2, 128)

    m_blocks, n_blocks, k_blocks = m_pad // tm, n_pad // tn, k_pad // tk

    vmem_limit = max(min(_footprint(tk) + (8 << 20), vmem_cap - (4 << 20)),
                     32 << 20)

    # ---- operand padding (no-op when already aligned) ----------------------
    xp = _pad2(x, m_pad, k_pad)
    wmu = _pad2(weight_mu, n_pad, k_pad)
    bmu = _pad2(bias_mu.reshape(1, -1), 1, n_pad)

    # ---- specs -------------------------------------------------------------
    if single_k:
        grid = (m_blocks, n_blocks)
        sem = ("parallel", "parallel")
        x_spec = pl.BlockSpec((tm, k_pad), lambda i, j: (i, 0))
        w_spec = pl.BlockSpec((tn, k_pad), lambda i, j: (j, 0))
        kvec_spec = pl.BlockSpec((1, k_pad), lambda i, j: (0, 0))
        nvec_spec = pl.BlockSpec((1, tn), lambda i, j: (0, j))
        o_spec = pl.BlockSpec((tm, tn), lambda i, j: (i, j))
        scratch = []
    else:
        grid = (m_blocks, n_blocks, k_blocks)
        sem = ("parallel", "parallel", "arbitrary")
        x_spec = pl.BlockSpec((tm, tk), lambda i, j, k: (i, k))
        w_spec = pl.BlockSpec((tn, tk), lambda i, j, k: (j, k))
        kvec_spec = pl.BlockSpec((1, k_pad), lambda i, j, k: (0, 0))  # resident
        nvec_spec = pl.BlockSpec((1, tn), lambda i, j, k: (0, j))
        o_spec = pl.BlockSpec((tm, tn), lambda i, j, k: (i, j))
        scratch = [pltpu.VMEM((tm, tn), jnp.float32)]

    comp = pltpu.CompilerParams(dimension_semantics=sem,
                                vmem_limit_bytes=int(vmem_limit))

    # ---- dispatch ----------------------------------------------------------
    out_bytes = m_pad * n_pad * x_itemsize
    if training:
        wsig = _pad2(weight_sigma, n_pad, k_pad)
        ein = _pad2(epsilon_in.reshape(1, -1), 1, k_pad)
        eout = _pad2(epsilon_out.reshape(1, -1), 1, n_pad)
        bsig = _pad2(bias_sigma.reshape(1, -1), 1, n_pad)

        flops = 2 * 2 * m_pad * n_pad * k_pad
        bytes_accessed = (x_itemsize * m_pad * k_pad * n_blocks
                          + w_itemsize * 2 * n_pad * k_pad * m_blocks
                          + 4 * (k_pad + 3 * n_pad) + out_bytes)

        kernel = (_make_train_direct_kernel(mxu_dtype) if single_k
                  else _make_train_reduce_kernel(mxu_dtype, tk))
        out_pad = pl.pallas_call(
            kernel,
            out_shape=jax.ShapeDtypeStruct((m_pad, n_pad), dtype),
            grid_spec=pltpu.PrefetchScalarGridSpec(
                num_scalar_prefetch=0,
                grid=grid,
                in_specs=[x_spec, w_spec, w_spec, kvec_spec, nvec_spec,
                          nvec_spec, nvec_spec],
                out_specs=o_spec,
                scratch_shapes=scratch),
            compiler_params=comp,
            cost_estimate=pl.CostEstimate(flops=flops, transcendentals=0,
                                          bytes_accessed=bytes_accessed),
        )(xp, wmu, wsig, ein, eout, bmu, bsig)
    else:
        flops = 2 * m_pad * n_pad * k_pad
        bytes_accessed = (x_itemsize * m_pad * k_pad * n_blocks
                          + w_itemsize * n_pad * k_pad * m_blocks
                          + 4 * n_pad + out_bytes)

        kernel = (_make_eval_direct_kernel(mxu_dtype) if single_k
                  else _make_eval_reduce_kernel(mxu_dtype))
        out_pad = pl.pallas_call(
            kernel,
            out_shape=jax.ShapeDtypeStruct((m_pad, n_pad), dtype),
            grid_spec=pltpu.PrefetchScalarGridSpec(
                num_scalar_prefetch=0,
                grid=grid,
                in_specs=[x_spec, w_spec, nvec_spec],
                out_specs=o_spec,
                scratch_shapes=scratch),
            compiler_params=comp,
            cost_estimate=pl.CostEstimate(flops=flops, transcendentals=0,
                                          bytes_accessed=bytes_accessed),
        )(xp, wmu, bmu)

    return out_pad[:batch, :out_features]


# ----------------------------------------------------------------------------
# Deterministic parameter / noise initialization (mirrors the PyTorch module)
# ----------------------------------------------------------------------------
def _scale_noise(key, size):
    # f(x) = sign(x) * sqrt(|x|)
    x = jax.random.normal(key, (size,), dtype=jnp.float32)
    return jnp.sign(x) * jnp.sqrt(jnp.abs(x))


def init_factorized_noisy_linear(key, in_features, out_features, std_init):
    k_wmu, k_bmu, k_ein, k_eout = jax.random.split(key, 4)
    std = 1.0 / math.sqrt(in_features)

    weight_mu = jax.random.uniform(k_wmu, (out_features, in_features),
                                   minval=-std, maxval=std, dtype=jnp.float32)
    weight_sigma = jnp.full((out_features, in_features),
                            std_init / math.sqrt(in_features), dtype=jnp.float32)
    bias_mu = jax.random.uniform(k_bmu, (out_features,),
                                 minval=-std, maxval=std, dtype=jnp.float32)
    bias_sigma = jnp.full((out_features,),
                          std_init / math.sqrt(in_features), dtype=jnp.float32)

    epsilon_in = _scale_noise(k_ein, in_features)
    epsilon_out = _scale_noise(k_eout, out_features)

    return dict(weight_mu=weight_mu, weight_sigma=weight_sigma,
                bias_mu=bias_mu, bias_sigma=bias_sigma,
                epsilon_in=epsilon_in, epsilon_out=epsilon_out)


# ----------------------------------------------------------------------------
# Reference implementation (plain JAX, mirrors the PyTorch module exactly)
# ----------------------------------------------------------------------------
def _reference_forward(x, p, training=True):
    weight_epsilon = jnp.outer(p["epsilon_out"], p["epsilon_in"])
    bias_epsilon = p["epsilon_out"]
    if training:
        w = p["weight_mu"] + p["weight_sigma"] * weight_epsilon
        b = p["bias_mu"] + p["bias_sigma"] * bias_epsilon
    else:
        w = p["weight_mu"]
        b = p["bias_mu"]
    return x @ w.T + b


if __name__ == "__main__":
    in_features, out_features = 32, 16
    batch = 8
    std_init = 0.5

    key = jax.random.PRNGKey(0)
    k_params, k_x = jax.random.split(key)

    params = init_factorized_noisy_linear(k_params, in_features, out_features,
                                          std_init)
    x = jax.random.normal(k_x, (batch, in_features), dtype=jnp.float32)

    args = (x, params["weight_mu"], params["weight_sigma"],
            params["epsilon_in"], params["epsilon_out"],
            params["bias_mu"], params["bias_sigma"])

    # Training-mode forward (noisy weights/bias), f32 MXU feed.
    y = jax.block_until_ready(noisy_linear_forward(*args, training=True))
    y_ref = _reference_forward(x, params, training=True)
    assert y.shape == (batch, out_features)
    assert jnp.allclose(y, y_ref, atol=1e-5, rtol=1e-5), "train-mode mismatch"

    # Eval-mode forward (plain linear, dedicated kernel streaming mu only).
    y_eval = jax.block_until_ready(noisy_linear_forward(*args, training=False))
    y_eval_ref = _reference_forward(x, params, training=False)
    assert jnp.allclose(y_eval, y_eval_ref, atol=1e-5, rtol=1e-5), \
        "eval-mode mismatch"

    # bf16 MXU feed (recommended on v6e/v7x); f32 accumulate, looser tolerance.
    y_bf16 = jax.block_until_ready(
        noisy_linear_forward(*args, training=True, mxu_dtype=jnp.bfloat16))
    assert jnp.allclose(y_bf16, y_ref, atol=5e-2, rtol=5e-2), \
        "bf16 train-mode mismatch"

    print("KERNEL_OK")
</pallas_src>

<mosaic_0001>
module attributes {stable_mosaic.version = 11 : i64} {
  func.func @kernel(%arg0: i32, %arg1: i32, %arg2: memref<8x128xf32, #tpu.memory_space<vmem>>, %arg3: memref<128x128xf32, #tpu.memory_space<vmem>>, %arg4: memref<128x128xf32, #tpu.memory_space<vmem>>, %arg5: memref<1x128xf32, #tpu.memory_space<vmem>>, %arg6: memref<1x128xf32, #tpu.memory_space<vmem>>, %arg7: memref<1x128xf32, #tpu.memory_space<vmem>>, %arg8: memref<1x128xf32, #tpu.memory_space<vmem>>, %arg9: memref<8x128xf32, #tpu.memory_space<vmem>>) attributes {dimension_semantics = [#tpu.dimension_semantics<parallel>, #tpu.dimension_semantics<parallel>], iteration_bounds = array<i64: 1, 1>, scalar_prefetch = 0 : i64, scratch_operands = 0 : i64, tpu.core_type = #tpu.core_type<tc>, window_params = [{transform_indices = @transform_0, window_bounds = array<i64: 8, 128>}, {transform_indices = @transform_1, window_bounds = array<i64: 128, 128>}, {transform_indices = @transform_2, window_bounds = array<i64: 128, 128>}, {pipeline_mode = #tpu.pipeline_mode<synchronous>, transform_indices = @transform_3, window_bounds = array<i64: 1, 128>}, {transform_indices = @transform_4, window_bounds = array<i64: 1, 128>}, {transform_indices = @transform_5, window_bounds = array<i64: 1, 128>}, {transform_indices = @transform_6, window_bounds = array<i64: 1, 128>}, {transform_indices = @transform_7, window_bounds = array<i64: 8, 128>}]} {
    %c0 = arith.constant 0 : index
    %c0_0 = arith.constant 0 : index
    %0 = vector.load %arg2[%c0, %c0_0] : memref<8x128xf32, #tpu.memory_space<vmem>>, vector<8x128xf32>
    %c0_1 = arith.constant 0 : index
    %c0_2 = arith.constant 0 : index
    %1 = vector.load %arg5[%c0_1, %c0_2] : memref<1x128xf32, #tpu.memory_space<vmem>>, vector<1x128xf32>
    %2 = vector.broadcast %1 : vector<1x128xf32> to vector<8x128xf32>
    %3 = arith.mulf %0, %2 : vector<8x128xf32>
    %c0_3 = arith.constant 0 : index
    %c0_4 = arith.constant 0 : index
    %4 = vector.load %arg3[%c0_3, %c0_4] : memref<128x128xf32, #tpu.memory_space<vmem>>, vector<128x128xf32>
    %cst = arith.constant dense<0.000000e+00> : vector<8x128xf32>
    %5 = tpu.matmul %0, %4, %cst {dimension_numbers = #tpu.dot_dimension_numbers<[1], [1], [0], [0], [0, 0, 1, 0], [], []>} : vector<8x128xf32>, vector<128x128xf32>, vector<8x128xf32> -> vector<8x128xf32>
    %c0_5 = arith.constant 0 : index
    %c0_6 = arith.constant 0 : index
    %6 = vector.load %arg4[%c0_5, %c0_6] : memref<128x128xf32, #tpu.memory_space<vmem>>, vector<128x128xf32>
    %cst_7 = arith.constant dense<0.000000e+00> : vector<8x128xf32>
    %7 = tpu.matmul %3, %6, %cst_7 {dimension_numbers = #tpu.dot_dimension_numbers<[1], [1], [0], [0], [0, 0, 1, 0], [], []>} : vector<8x128xf32>, vector<128x128xf32>, vector<8x128xf32> -> vector<8x128xf32>
    %c0_8 = arith.constant 0 : index
    %c0_9 = arith.constant 0 : index
    %8 = vector.load %arg6[%c0_8, %c0_9] : memref<1x128xf32, #tpu.memory_space<vmem>>, vector<1x128xf32>
    %c0_10 = arith.constant 0 : index
    %c0_11 = arith.constant 0 : index
    %9 = vector.load %arg7[%c0_10, %c0_11] : memref<1x128xf32, #tpu.memory_space<vmem>>, vector<1x128xf32>
    %c0_12 = arith.constant 0 : index
    %c0_13 = arith.constant 0 : index
    %10 = vector.load %arg8[%c0_12, %c0_13] : memref<1x128xf32, #tpu.memory_space<vmem>>, vector<1x128xf32>
    %11 = arith.mulf %10, %8 : vector<1x128xf32>
    %12 = arith.addf %9, %11 : vector<1x128xf32>
    %13 = vector.broadcast %8 : vector<1x128xf32> to vector<8x128xf32>
    %14 = arith.mulf %7, %13 : vector<8x128xf32>
    %15 = arith.addf %5, %14 : vector<8x128xf32>
    %16 = vector.broadcast %12 : vector<1x128xf32> to vector<8x128xf32>
    %17 = arith.addf %15, %16 : vector<8x128xf32>
    %c0_14 = arith.constant 0 : index
    %c0_15 = arith.constant 0 : index
    %18 = vector.load %arg9[%c0_14, %c0_15] : memref<8x128xf32, #tpu.memory_space<vmem>>, vector<8x128xf32>
    tpu.vector_store %arg9[%c0_14, %c0_15], %17 {strides = array<i32>} : memref<8x128xf32, #tpu.memory_space<vmem>>, vector<8x128xf32>,
    return
  }
  func.func @transform_0(%arg0: i32, %arg1: i32) -> (i32, i32) {
    %c0_i32 = arith.constant 0 : i32
    %c0_i32_0 = arith.constant 0 : i32
    return %arg0, %c0_i32 : i32, i32
  }
  func.func @transform_1(%arg0: i32, %arg1: i32) -> (i32, i32) {
    %c0_i32 = arith.constant 0 : i32
    %c0_i32_0 = arith.constant 0 : i32
    return %arg1, %c0_i32 : i32, i32
  }
  func.func @transform_2(%arg0: i32, %arg1: i32) -> (i32, i32) {
    %c0_i32 = arith.constant 0 : i32
    %c0_i32_0 = arith.constant 0 : i32
    return %arg1, %c0_i32 : i32, i32
  }
  func.func @transform_3(%arg0: i32, %arg1: i32) -> (i32, i32) {
    %c0_i32 = arith.constant 0 : i32
    %c0_i32_0 = arith.constant 0 : i32
    %c0_i32_1 = arith.constant 0 : i32
    return %c0_i32, %c0_i32_0 : i32, i32
  }
  func.func @transform_4(%arg0: i32, %arg1: i32) -> (i32, i32) {
    %c0_i32 = arith.constant 0 : i32
    %c0_i32_0 = arith.constant 0 : i32
    return %c0_i32, %arg1 : i32, i32
  }
  func.func @transform_5(%arg0: i32, %arg1: i32) -> (i32, i32) {
    %c0_i32 = arith.constant 0 : i32
    %c0_i32_0 = arith.constant 0 : i32
    return %c0_i32, %arg1 : i32, i32
  }
  func.func @transform_6(%arg0: i32, %arg1: i32) -> (i32, i32) {
    %c0_i32 = arith.constant 0 : i32
    %c0_i32_0 = arith.constant 0 : i32
    return %c0_i32, %arg1 : i32, i32
  }
  func.func @transform_7(%arg0: i32, %arg1: i32) -> (i32, i32) {
    %c0_i32 = arith.constant 0 : i32
    return %arg0, %arg1 : i32, i32
  }
}

</mosaic_0001>

<bundles_post_ra>
// kernel: tpu_custom_call.1
= control target key start
LH: loop header
LB: loop body
LE: loop exit
PB: predicated region body
PF: predicated region fallthrough
CT: control target
= control target key end

     0   :  { %12 = vsyncpa [#allocation3], 0  ;;  %s588_s0 = inlined_call_operand.hbm [shape: f32[8,128], index: 0, kind: input, shape index: {}]   ;;  %s589_s1 = inlined_call_operand.hbm [shape: f32[128,128], index: 1, kind: input, shape index: {}]   ;;  %s590_s2 = inlined_call_operand.hbm [shape: f32[128,128], index: 2, kind: input, shape index: {}]   ;;  %s591_s3 = inlined_call_operand.vmem [shape: f32[1,128], index: 3, kind: input, shape index: {}]   ;;  %s592_s4 = inlined_call_operand.vmem [shape: f32[1,128], index: 4, kind: input, shape index: {}]   ;;  %s593_s5 = inlined_call_operand.vmem [shape: f32[1,128], index: 5, kind: input, shape index: {}]   ;;  %s594_s6 = inlined_call_operand.vmem [shape: f32[1,128], index: 6, kind: input, shape index: {}]   ;;  %s595_s7 = inlined_call_operand.hbm [shape: f32[8,128], index: 7, kind: output, shape index: {}]  }
   0x1   :  { %13 = vsyncpa [#allocation6], 0 }
   0x2   :  { %14 = vsyncpa [#allocation4], 0  ;;  %s482_s24 = smov [#allocation5]  }
   0x3   :  { %s30_s25 = sshll.u32 %s482_s24, 4  ;;  %s31_s25 = int_to_ptr.vmem [resolvable:$true] %s30_s25 }
   0x4   :  { %s404_s26 = scalar_lea.vmem %s31_s25, 2048  ;;  %p409_p1 = scmp.lt.s32.totalorder %s31_s25, %s31_s25 }
   0x5   :  { %p405_p0 = scmp.ne.s32.totalorder %s31_s25, %s404_s26  ;;  %p410_p2 = scmp.lt.s32.totalorder %s404_s26, %s404_s26 }
   0x7   :  { %p411_p3 = por %p410_p2, %p409_p1 }
   0x9   :  { %p412_p4 = pnand %p411_p3, %p405_p0 }
   0xb   :  { %415 = shalt.err (!%p412_p4)
}
   0xc   :  { %s483_s27 = smov 128   ;;  %s484_s28 = smov 8  }
   0xd   :  { %36 = dma.hbm_to_vmem [thread:$0]  %s589_s1, 2048, %s31_s25, [#allocation6], %s483_s27, %s483_s27, %s484_s28  }
   0xe   :  { %s485_s8 = smov [#allocation2]   ;;  %s486_s10 = smov [#allocation7]  }
   0xf   :  { %s21_s9 = sshll.u32 %s485_s8, 4  ;;  %s42_s11 = sshll.u32 %s486_s10, 4  ;;  %s22_s9 = int_to_ptr.vmem [resolvable:$true] %s21_s9  ;;  %s43_s11 = int_to_ptr.vmem [resolvable:$true] %s42_s11 }
  0x10   :  { %s424_s12 = scalar_lea.vmem %s22_s9, 128  ;;  %p429_p6 = scmp.lt.s32.totalorder %s22_s9, %s22_s9 }
  0x11   :  { %p425_p5 = scmp.ne.s32.totalorder %s22_s9, %s424_s12  ;;  %p430_p7 = scmp.lt.s32.totalorder %s424_s12, %s424_s12 }
  0x13   :  { %p431_p8 = por %p430_p7, %p429_p6 }
  0x15   :  { %p432_p9 = pnand %p431_p8, %p425_p5 }
  0x17   :  { %435 = shalt.err (!%p432_p9)
}
  0x18   :  { %24 = dma.hbm_to_vmem [thread:$0]  %s588_s0, 128, %s22_s9, [#allocation3]  }
  0x19   :  { %s444_s15 = scalar_lea.vmem %s43_s11, 2048  ;;  %p449_p11 = scmp.lt.s32.totalorder %s43_s11, %s43_s11 }
  0x1a   :  { %p445_p10 = scmp.ne.s32.totalorder %s43_s11, %s444_s15  ;;  %p450_p12 = scmp.lt.s32.totalorder %s444_s15, %s444_s15 }
  0x1c   :  { %p451_p13 = por %p450_p12, %p449_p11 }
  0x1e   :  { %p452_p0 = pnand %p451_p13, %p445_p10 }
  0x20   :  { %455 = shalt.err (!%p452_p0)
}
  0x21   :  { %48 = dma.hbm_to_vmem [thread:$0]  %s590_s2, 2048, %s43_s11, [#allocation6], %s483_s27, %s483_s27, %s484_s28  }
  0x22   :  { %476 = dma.done.wait [#allocation3], 128  }
  0x23   :  { %477 = vsyncadd [#allocation3], 4294967168 }
  0x24   :  { %478 = dma.done.wait [#allocation6], 4096  }
  0x25   :  { %479 = vsyncadd [#allocation6], 4294963200  ;;  %v487_v0 = vmov 0.0   ;;  %vm488_vm0 = vmmov 0   ;;  %v106_v1 = vld [vmem:[#allocation7 + $0x78] sm:$0xff]  ;;  %v105_v3 = vld [vmem:[#allocation7 + $0x70] sm:$0xff]  ;;  %v183_v36 = vlaneseq }
  0x26   :  { %318 = vmatprep.subr.mxu0 %v487_v0  ;;  %353 = vmatprep.subr.mxu1 %v487_v0  ;;  %v90_v2 = vld [vmem:[#allocation5 + $0x78] sm:$0xff]  ;;  %v89_v4 = vld [vmem:[#allocation5 + $0x70] sm:$0xff]  ;;  %v104_v5 = vld [vmem:[#allocation7 + $0x68] sm:$0xff]  ;;  %s489_s22 = smov [#allocation8]  }
  0x27   :  { %350 = vmatprep.mubr.msk.f32.mxu0 %vm488_vm0, %v487_v0  ;;  %385 = vmatprep.mubr.msk.f32.mxu1 %vm488_vm0, %v487_v0  ;;  %v88_v6 = vld [vmem:[#allocation5 + $0x68] sm:$0xff]  ;;  %v103_v7 = vld [vmem:[#allocation7 + $0x60] sm:$0xff]  ;;  %v102_v9 = vld [vmem:[#allocation7 + $0x58] sm:$0xff]  ;;  %v184_v37 = vshrl.u32 %v183_v36, 7 }
  0x28   :  { %319 = vmatpush3.xpose.msra.mxu0 %v106_v1  ;;  %354 = vmatpush3.xpose.msra.mxu1 %v90_v2  ;;  %v87_v8 = vld [vmem:[#allocation5 + $0x60] sm:$0xff]  ;;  %v86_v10 = vld [vmem:[#allocation5 + $0x58] sm:$0xff]  ;;  %v101_v11 = vld [vmem:[#allocation7 + $0x50] sm:$0xff] }
  0x29   :  { %320 = vmatprep.subr.mxu0 %v487_v0  ;;  %355 = vmatprep.subr.mxu1 %v487_v0  ;;  %v85_v12 = vld [vmem:[#allocation5 + $0x50] sm:$0xff]  ;;  %v100_v13 = vld [vmem:[#allocation7 + $0x48] sm:$0xff]  ;;  %v99_v15 = vld [vmem:[#allocation7 + $0x40] sm:$0xff]  ;;  %v185_v41 = vsub.s32 0, %v184_v37 }
  0x2a   :  { %v84_v14 = vld [vmem:[#allocation5 + $0x48] sm:$0xff]  ;;  %v83_v16 = vld [vmem:[#allocation5 + $0x40] sm:$0xff]  ;;  %v98_v17 = vld [vmem:[#allocation7 + $0x38] sm:$0xff] }
  0x2b   :  { %v82_v18 = vld [vmem:[#allocation5 + $0x38] sm:$0xff]  ;;  %v97_v19 = vld [vmem:[#allocation7 + $0x30] sm:$0xff]  ;;  %v96_v21 = vld [vmem:[#allocation7 + $0x28] sm:$0xff] }
  0x2c   :  { %321 = vmatpush3.xpose.msra.mxu0 %v105_v3  ;;  %356 = vmatpush3.xpose.msra.mxu1 %v89_v4  ;;  %v81_v20 = vld [vmem:[#allocation5 + $0x30] sm:$0xff]  ;;  %v80_v22 = vld [vmem:[#allocation5 + $0x28] sm:$0xff]  ;;  %v95_v23 = vld [vmem:[#allocation7 + $0x20] sm:$0xff] }
  0x2d   :  { %322 = vmatprep.subr.mxu0 %v487_v0  ;;  %357 = vmatprep.subr.mxu1 %v487_v0  ;;  %v79_v24 = vld [vmem:[#allocation5 + $0x20] sm:$0xff]  ;;  %v94_v25 = vld [vmem:[#allocation7 + $0x18] sm:$0xff]  ;;  %v93_v27 = vld [vmem:[#allocation7 + $0x10] sm:$0xff] }
  0x2e   :  { %v78_v26 = vld [vmem:[#allocation5 + $0x18] sm:$0xff]  ;;  %v77_v28 = vld [vmem:[#allocation5 + $0x10] sm:$0xff]  ;;  %v92_v29 = vld [vmem:[#allocation7 + $0x8] sm:$0xff] }
  0x2f   :  { %v76_v30 = vld [vmem:[#allocation5 + $0x8] sm:$0xff]  ;;  %v66_v31 = vld [vmem:[#allocation2] sm:$0xff]  ;;  %v91_v33 = vld [vmem:[#allocation7] sm:$0xff] }
  0x30   :  { %323 = vmatpush3.xpose.msra.mxu0 %v104_v5  ;;  %358 = vmatpush3.xpose.msra.mxu1 %v88_v6  ;;  %v283_v32 = vld [vmem:[%s591_s3] ss:$0 sm:$0xff]  ;;  %v75_v34 = vld [vmem:[#allocation5] sm:$0xff] }
  0x31   :  { %324 = vmatprep.subr.mxu0 %v487_v0  ;;  %359 = vmatprep.subr.mxu1 %v487_v0  ;;  %v74_v35 = vmul.f32 %v283_v32, %v66_v31  ;;  %v177_v38 = vld [vmem:[%s592_s4] sm:$0x1]  ;;  %s273_s4 = sshll.u32 %s489_s22, 4  ;;  %s274_s4 = int_to_ptr.vmem [resolvable:$true] %s273_s4 }
  0x32   :  { %v179_v39 = vld [vmem:[%s594_s6] sm:$0x1]  ;;  %v186_v43 = vrot.slane %v177_v38, %v185_v41  ;;  %s456_s6 = scalar_lea.vmem %s274_s4, 128  ;;  %p461_p2 = scmp.lt.s32.totalorder %s274_s4, %s274_s4 }
  0x33   :  { %v180_v40 = vmul.f32 %v179_v39, %v177_v38  ;;  %v178_v42 = vld [vmem:[%s593_s5] sm:$0x1]  ;;  %p457_p1 = scmp.ne.s32.totalorder %s274_s4, %s456_s6  ;;  %p462_p3 = scmp.lt.s32.totalorder %s456_s6, %s456_s6 }
  0x34   :  { %325 = vmatpush3.xpose.msra.mxu0 %v103_v7  ;;  %360 = vmatpush3.xpose.msra.mxu1 %v87_v8 }
  0x35   :  { %326 = vmatprep.subr.mxu0 %v487_v0  ;;  %361 = vmatprep.subr.mxu1 %v487_v0  ;;  %v181_v44 = vadd.f32 %v180_v40, %v178_v42  ;;  %p463_p4 = por %p462_p3, %p461_p2 }
  0x37   :  { %v263_v48 = vrot.slane %v181_v44, %v185_v41  ;;  %p464_p5 = pnand %p463_p4, %p457_p1 }
  0x38   :  { %327 = vmatpush3.xpose.msra.mxu0 %v102_v9  ;;  %362 = vmatpush3.xpose.msra.mxu1 %v86_v10 }
  0x39   :  { %328 = vmatprep.subr.mxu0 %v487_v0  ;;  %363 = vmatprep.subr.mxu1 %v487_v0 }
  0x3c   :  { %329 = vmatpush3.xpose.msra.mxu0 %v101_v11  ;;  %364 = vmatpush3.xpose.msra.mxu1 %v85_v12 }
  0x3d   :  { %330 = vmatprep.subr.mxu0 %v487_v0  ;;  %365 = vmatprep.subr.mxu1 %v487_v0 }
  0x40   :  { %331 = vmatpush3.xpose.msra.mxu0 %v100_v13  ;;  %366 = vmatpush3.xpose.msra.mxu1 %v84_v14 }
  0x41   :  { %332 = vmatprep.subr.mxu0 %v487_v0  ;;  %367 = vmatprep.subr.mxu1 %v487_v0 }
  0x44   :  { %333 = vmatpush3.xpose.msra.mxu0 %v99_v15  ;;  %368 = vmatpush3.xpose.msra.mxu1 %v83_v16 }
  0x45   :  { %334 = vmatprep.subr.mxu0 %v487_v0  ;;  %369 = vmatprep.subr.mxu1 %v487_v0 }
  0x48   :  { %335 = vmatpush3.xpose.msra.mxu0 %v98_v17  ;;  %370 = vmatpush3.xpose.msra.mxu1 %v82_v18 }
  0x49   :  { %336 = vmatprep.subr.mxu0 %v487_v0  ;;  %371 = vmatprep.subr.mxu1 %v487_v0 }
  0x4c   :  { %337 = vmatpush3.xpose.msra.mxu0 %v97_v19  ;;  %372 = vmatpush3.xpose.msra.mxu1 %v81_v20 }
  0x4d   :  { %338 = vmatprep.subr.mxu0 %v487_v0  ;;  %373 = vmatprep.subr.mxu1 %v487_v0 }
  0x50   :  { %339 = vmatpush3.xpose.msra.mxu0 %v96_v21  ;;  %374 = vmatpush3.xpose.msra.mxu1 %v80_v22 }
  0x51   :  { %340 = vmatprep.subr.mxu0 %v487_v0  ;;  %375 = vmatprep.subr.mxu1 %v487_v0 }
  0x54   :  { %341 = vmatpush3.xpose.msra.mxu0 %v95_v23  ;;  %376 = vmatpush3.xpose.msra.mxu1 %v79_v24 }
  0x55   :  { %342 = vmatprep.subr.mxu0 %v487_v0  ;;  %377 = vmatprep.subr.mxu1 %v487_v0 }
  0x58   :  { %343 = vmatpush3.xpose.msra.mxu0 %v94_v25  ;;  %378 = vmatpush3.xpose.msra.mxu1 %v78_v26 }
  0x59   :  { %344 = vmatprep.subr.mxu0 %v487_v0  ;;  %379 = vmatprep.subr.mxu1 %v487_v0 }
  0x5c   :  { %345 = vmatpush3.xpose.msra.mxu0 %v93_v27  ;;  %380 = vmatpush3.xpose.msra.mxu1 %v77_v28 }
  0x5d   :  { %346 = vmatprep.subr.mxu0 %v487_v0  ;;  %381 = vmatprep.subr.mxu1 %v487_v0 }
  0x60   :  { %347 = vmatpush3.xpose.msra.mxu0 %v92_v29  ;;  %382 = vmatpush3.xpose.msra.mxu1 %v76_v30 }
  0x61   :  { %348 = vmatprep.subr.mxu0 %v487_v0  ;;  %383 = vmatprep.subr.mxu1 %v487_v0 }
  0x64   :  { %349 = vmatpush3.xpose.msra.mxu0 %v91_v33  ;;  %384 = vmatpush3.xpose.msra.mxu1 %v75_v34 }
  0x67   :  { %351 = vmatmul.mubr.f32.vlgmr.msra.gmra.mxu0 %v74_v35  ;;  %386 = vmatmul.mubr.f32.vlgmr.msra.gmra.mxu1 %v66_v31 }
 0x127   :  { %v173_v45 = vpop.f32.mrf.mxu0  ;;  %v255_v46 = vpop.f32.mrf.mxu1 }
 0x128   :  { %v188_v47 = vmul.f32 %v186_v43, %v173_v45 }
 0x129   :  { %v352_v49 = vpop.f32.mrf.mxu0  ;;  %v387_v50 = vpop.f32.mrf.mxu1 }
 0x12a   :  { %v256_v51 = vadd.f32 %v255_v46, %v188_v47 }
 0x12c   :  { %v265_v52 = vadd.f32 %v263_v48, %v256_v51 }
 0x12e   :  { %266 = vst [vmem:[#allocation8] sm:$0xff] %v265_v52 }
 0x12f   :  { %467 = shalt.err (!%p464_p5)
}
 0x130   :  { %276 = dma.vmem_to_hbm [thread:$0]  %s274_s4, 128, %s595_s7, [#allocation4]  }
 0x131   :  { %480 = dma.done.wait [#allocation4], 128  }
 0x132   :  { %481 = vsyncadd [#allocation4], 4294967168 }
 0x133   :  { %280 = vsyncpa [#allocation3], 1 }
 0x134   :  { %281 = vsyncpa [#allocation6], 1 }
 0x135   :  { %282 = vsyncpa [#allocation4], 1 }

</bundles_post_ra>
